<compile_context>
chip_gen: v7x
topology: tpu7x:2x2x1
jax: 0.10.0
libtpu: 0.0.40
codegen_flags: <defaults>
</compile_context>

<pallas_src>
import jax
import jax.numpy as jnp
from jax.experimental import pallas as pl
from jax.experimental.pallas import tpu as pltpu


# ---------------------------------------------------------------------------
# Kernel: whole 3-layer MLP fused into one grid step per batch tile.
# ---------------------------------------------------------------------------
def actor_kernel(x_ref, w1_ref, b1_ref, w2_ref, b2_ref, w3_ref, b3_ref, o_ref):
    cdt = w1_ref.dtype  # MXU operand dtype: f32 (v5e) or bf16 (v6e/v7x).
    f32 = jnp.float32

    def relu_cast(h):
        # Bias-add / ReLU run in f32 (VPU); cast back to the MXU operand dtype
        # only when it actually differs, so the v5e f32 path has zero extra
        # pack/convert work.
        h = jnp.maximum(h, 0.0)
        return h if h.dtype == cdt else h.astype(cdt)

    # Layer 1: Linear + ReLU (MXU matmul, f32 accumulate).
    h = jnp.dot(x_ref[...], w1_ref[...], preferred_element_type=f32) + b1_ref[...]
    h = relu_cast(h)

    # Layer 2: Linear + ReLU.
    h = jnp.dot(h, w2_ref[...], preferred_element_type=f32) + b2_ref[...]
    h = relu_cast(h)

    # Layer 3: Linear + Tanh (tanh goes to the EUP, in f32); lane-dense store.
    h = jnp.dot(h, w3_ref[...], preferred_element_type=f32) + b3_ref[...]
    o_ref[...] = jnp.tanh(h).astype(o_ref.dtype)


# ---------------------------------------------------------------------------
# Helpers.
# ---------------------------------------------------------------------------
def _round_up(x, m):
    return ((x + m - 1) // m) * m


def _device_kind():
    try:
        return jax.devices()[0].device_kind.lower()
    except Exception:  # pragma: no cover - defensive
        return ""


def _default_compute_dtype():
    # v5e has no bf16 VPU/EUP path, so bf16 operands buy nothing there; v6e/v7x
    # MXUs are bf16-native and bf16 halves state/weight/output DMA bytes.
    kind = _device_kind()
    if "v5" in kind:
        return jnp.float32
    return jnp.bfloat16


def _default_parallel_tiles():
    # v7x has 2 TensorCores per chip; "parallel" grid axes shard across them.
    kind = _device_kind()
    return 2 if "v7" in kind else 1


def _choose_tile_b(batch, batch_tile, num_parallel_tiles, min_rows_per_tile=256):
    """Pick the batch tile that minimizes grid steps (1 step normally; ~2 steps
    on v7x for large batches so both TensorCores get work)."""
    sub = 16  # safe sublane multiple for bf16 operands
    b_min = _round_up(batch, sub)
    if num_parallel_tiles > 1 and batch >= num_parallel_tiles * min_rows_per_tile:
        tile = _round_up(pl.cdiv(batch, num_parallel_tiles), sub)
    else:
        tile = b_min
    tile = min(tile, _round_up(max(batch_tile, sub), sub))
    return max(tile, sub)


# ---------------------------------------------------------------------------
# One-time parameter preparation (hoisted out of the forward hot path).
# ---------------------------------------------------------------------------
def prepare_actor_params(params, *, compute_dtype=None, out_dtype=None,
                         lane_width=128):
    """Pad w3/b3 to a lane-dense (multiple-of-128) action dim and cast weights
    to the MXU operand dtype ONCE.  Biases stay f32 (bias-add/ReLU/tanh run in
    f32 inside the kernel).  Call this at init / after each param update."""
    cdt = jnp.dtype(compute_dtype if compute_dtype is not None
                    else _default_compute_dtype())
    odt = jnp.dtype(out_dtype if out_dtype is not None else cdt)

    w1, b1, w2, b2, w3, b3 = (params["w1"], params["b1"], params["w2"],
                              params["b2"], params["w3"], params["b3"])
    num_actions = w3.shape[1]
    hidden = w3.shape[0]
    a_pad = _round_up(max(num_actions, lane_width), lane_width)
    if a_pad != num_actions:
        # Zero-padded columns -> tanh(0) = 0 in the padded lanes; sliced off by
        # the wrapper (or ignored by a padded-slab consumer).
        w3 = jnp.zeros((hidden, a_pad), w3.dtype).at[:, :num_actions].set(w3)
        b3 = jnp.zeros((1, a_pad), b3.dtype).at[:, :num_actions].set(b3)

    return {
        "w1": w1.astype(cdt), "b1": b1.astype(jnp.float32),
        "w2": w2.astype(cdt), "b2": b2.astype(jnp.float32),
        "w3": w3.astype(cdt), "b3": b3.astype(jnp.float32),
        "num_actions": int(num_actions),     # static metadata
        "out_dtype": odt,                    # static metadata
    }


# ---------------------------------------------------------------------------
# Forward pass.
# ---------------------------------------------------------------------------
def actor_forward(state, prepared, *, batch_tile=2048, num_parallel_tiles=None,
                  return_padded=False):
    """state: (B, num_inputs) float array.
    prepared: output of prepare_actor_params (pre-padded, pre-cast weights).
    return_padded: skip the final slice and hand back the lane-dense
      (b_pad, 128) slab (lets the consumer slice lazily, avoiding a copy)."""
    w1, b1, w2, b2, w3, b3 = (prepared["w1"], prepared["b1"], prepared["w2"],
                              prepared["b2"], prepared["w3"], prepared["b3"])
    num_actions = prepared["num_actions"]
    out_dtype = prepared["out_dtype"]
    cdt = jnp.dtype(w1.dtype)

    B, num_inputs = state.shape
    hidden = w1.shape[1]
    a_pad = w3.shape[1]

    splits = (num_parallel_tiles if num_parallel_tiles is not None
              else _default_parallel_tiles())
    tile_b = _choose_tile_b(B, batch_tile, splits)
    b_pad = _round_up(B, tile_b)

    x = state.astype(cdt)
    if b_pad != B:
        x = jnp.pad(x, ((0, b_pad - B), (0, 0)))

    grid = (b_pad // tile_b,)
    rep = lambda shape: pl.BlockSpec(shape, lambda i: (0, 0))  # replicated params

    # Advisory cost, reflecting the padded work actually issued.
    flops = 2 * b_pad * (num_inputs * hidden + hidden * hidden + hidden * a_pad)
    wbytes = (num_inputs * hidden + hidden * hidden + hidden * a_pad) * cdt.itemsize
    bbytes = (2 * hidden + a_pad) * 4
    bytes_accessed = (b_pad * num_inputs * cdt.itemsize + wbytes + bbytes
                      + b_pad * a_pad * jnp.dtype(out_dtype).itemsize)
    cost = pl.CostEstimate(flops=flops, transcendentals=b_pad * a_pad,
                           bytes_accessed=bytes_accessed)

    out = pl.pallas_call(
        actor_kernel,
        out_shape=jax.ShapeDtypeStruct((b_pad, a_pad), out_dtype),
        grid_spec=pltpu.PrefetchScalarGridSpec(
            num_scalar_prefetch=0,
            grid=grid,
            in_specs=[
                pl.BlockSpec((tile_b, num_inputs), lambda i: (i, 0)),  # state tile
                rep((num_inputs, hidden)),   # w1
                rep((1, hidden)),            # b1 (f32)
                rep((hidden, hidden)),       # w2
                rep((1, hidden)),            # b2 (f32)
                rep((hidden, a_pad)),        # w3 (lane-padded)
                rep((1, a_pad)),             # b3 (lane-padded, f32)
            ],
            out_specs=pl.BlockSpec((tile_b, a_pad), lambda i: (i, 0)),
        ),
        compiler_params=pltpu.CompilerParams(
            dimension_semantics=("parallel",)),
        cost_estimate=cost,
    )(x, w1, b1, w2, b2, w3, b3)

    if return_padded:
        return out  # lane-dense (b_pad, 128) slab; consumer slices lazily
    return out[:B, :num_actions]


# ---------------------------------------------------------------------------
# Deterministic init mimicking nn.Linear's U(-1/sqrt(fan_in), 1/sqrt(fan_in)).
# Weights are stored transposed: (in_features, out_features).
# ---------------------------------------------------------------------------
def init_actor_params(key, num_inputs, num_actions, hidden_size):
    ks = jax.random.split(key, 6)

    def linear(kw, kb, fan_in, fan_out):
        bound = 1.0 / jnp.sqrt(jnp.float32(fan_in))
        w = jax.random.uniform(kw, (fan_in, fan_out), jnp.float32, -bound, bound)
        b = jax.random.uniform(kb, (1, fan_out), jnp.float32, -bound, bound)
        return w, b

    w1, b1 = linear(ks[0], ks[1], num_inputs, hidden_size)
    w2, b2 = linear(ks[2], ks[3], hidden_size, hidden_size)
    w3, b3 = linear(ks[4], ks[5], hidden_size, num_actions)
    return {"w1": w1, "b1": b1, "w2": w2, "b2": b2, "w3": w3, "b3": b3}


if __name__ == "__main__":
    # Small shapes consistent with the module. B=50 deliberately exercises the
    # padded / ragged-batch path (single grid step).
    batch, num_inputs, num_actions, hidden_size = 50, 16, 4, 32

    key = jax.random.PRNGKey(0)
    pkey, skey = jax.random.split(key)
    params = init_actor_params(pkey, num_inputs, num_actions, hidden_size)
    state = jax.random.normal(skey, (batch, num_inputs), jnp.float32)

    # Pure-JAX reference of the same forward pass.
    def ref(x, p):
        h = jnp.maximum(x @ p["w1"] + p["b1"], 0.0)
        h = jnp.maximum(h @ p["w2"] + p["b2"], 0.0)
        return jnp.tanh(h @ p["w3"] + p["b3"])

    expected = ref(state, params)

    # Exact f32 path (v5e default): f32 operands, f32 store, no in-kernel casts.
    prep_f32 = prepare_actor_params(params, compute_dtype=jnp.float32)
    out_f32 = jax.block_until_ready(actor_forward(state, prep_f32))
    assert out_f32.shape == (batch, num_actions)
    assert jnp.allclose(out_f32, expected, atol=1e-5, rtol=1e-5)

    # bf16 path (v6e/v7x default): bf16 MXU operands + bf16 store, f32
    # accumulate / elementwise.  Results differ slightly from the f32 path.
    prep_bf16 = prepare_actor_params(params, compute_dtype=jnp.bfloat16)
    out_bf16 = jax.block_until_ready(actor_forward(state, prep_bf16))
    assert out_bf16.shape == (batch, num_actions)
    assert jnp.allclose(out_bf16.astype(jnp.float32), expected,
                        atol=3e-2, rtol=3e-2)

    # Hardware-default path (auto dtype + auto core-split heuristics).
    prep_auto = prepare_actor_params(params)
    out_auto = jax.block_until_ready(actor_forward(state, prep_auto))
    assert out_auto.shape == (batch, num_actions)
    assert jnp.allclose(out_auto.astype(jnp.float32), expected,
                        atol=3e-2, rtol=3e-2)

    # Explicit 2-tile path (what v7x would use for large batches): exercises a
    # multi-step "parallel" grid and the padded-slab output option.
    big_state = jax.random.normal(skey, (1024, num_inputs), jnp.float32)
    big_expected = ref(big_state, params)
    out_big_pad = jax.block_until_ready(
        actor_forward(big_state, prep_f32, num_parallel_tiles=2,
                      return_padded=True))
    assert out_big_pad.shape[0] >= 1024 and out_big_pad.shape[1] == 128
    assert jnp.allclose(out_big_pad[:1024, :num_actions], big_expected,
                        atol=1e-5, rtol=1e-5)

    print("KERNEL_OK")
</pallas_src>

<mosaic_0001>
module attributes {stable_mosaic.version = 11 : i64} {
  func.func @actor_kernel(%arg0: i32, %arg1: memref<64x16xf32, #tpu.memory_space<vmem>>, %arg2: memref<16x32xf32, #tpu.memory_space<vmem>>, %arg3: memref<1x32xf32, #tpu.memory_space<vmem>>, %arg4: memref<32x32xf32, #tpu.memory_space<vmem>>, %arg5: memref<1x32xf32, #tpu.memory_space<vmem>>, %arg6: memref<32x128xf32, #tpu.memory_space<vmem>>, %arg7: memref<1x128xf32, #tpu.memory_space<vmem>>, %arg8: memref<64x128xf32, #tpu.memory_space<vmem>>) attributes {dimension_semantics = [#tpu.dimension_semantics<parallel>], iteration_bounds = array<i64: 1>, scalar_prefetch = 0 : i64, scratch_operands = 0 : i64, tpu.core_type = #tpu.core_type<tc>, window_params = [{transform_indices = @transform_0, window_bounds = array<i64: 64, 16>}, {pipeline_mode = #tpu.pipeline_mode<synchronous>, transform_indices = @transform_1, window_bounds = array<i64: 16, 32>}, {pipeline_mode = #tpu.pipeline_mode<synchronous>, transform_indices = @transform_2, window_bounds = array<i64: 1, 32>}, {pipeline_mode = #tpu.pipeline_mode<synchronous>, transform_indices = @transform_3, window_bounds = array<i64: 32, 32>}, {pipeline_mode = #tpu.pipeline_mode<synchronous>, transform_indices = @transform_4, window_bounds = array<i64: 1, 32>}, {pipeline_mode = #tpu.pipeline_mode<synchronous>, transform_indices = @transform_5, window_bounds = array<i64: 32, 128>}, {pipeline_mode = #tpu.pipeline_mode<synchronous>, transform_indices = @transform_6, window_bounds = array<i64: 1, 128>}, {transform_indices = @transform_7, window_bounds = array<i64: 64, 128>}]} {
    %c0 = arith.constant 0 : index
    %c0_0 = arith.constant 0 : index
    %0 = vector.load %arg1[%c0, %c0_0] : memref<64x16xf32, #tpu.memory_space<vmem>>, vector<64x16xf32>
    %c0_1 = arith.constant 0 : index
    %c0_2 = arith.constant 0 : index
    %1 = vector.load %arg2[%c0_1, %c0_2] : memref<16x32xf32, #tpu.memory_space<vmem>>, vector<16x32xf32>
    %cst = arith.constant dense<0.000000e+00> : vector<64x32xf32>
    %2 = tpu.matmul %0, %1, %cst {dimension_numbers = #tpu.dot_dimension_numbers<[1], [0], [0], [1], [0, 0, 1, 1], [], []>} : vector<64x16xf32>, vector<16x32xf32>, vector<64x32xf32> -> vector<64x32xf32>
    %c0_3 = arith.constant 0 : index
    %c0_4 = arith.constant 0 : index
    %3 = vector.load %arg3[%c0_3, %c0_4] : memref<1x32xf32, #tpu.memory_space<vmem>>, vector<1x32xf32>
    %4 = vector.broadcast %3 : vector<1x32xf32> to vector<64x32xf32>
    %5 = arith.addf %2, %4 : vector<64x32xf32>
    %cst_5 = arith.constant 0.000000e+00 : f32
    %6 = vector.broadcast %cst_5 : f32 to vector<64x32xf32>
    %7 = arith.maximumf %5, %6 : vector<64x32xf32>
    %c0_6 = arith.constant 0 : index
    %c0_7 = arith.constant 0 : index
    %8 = vector.load %arg4[%c0_6, %c0_7] : memref<32x32xf32, #tpu.memory_space<vmem>>, vector<32x32xf32>
    %cst_8 = arith.constant dense<0.000000e+00> : vector<64x32xf32>
    %9 = tpu.matmul %7, %8, %cst_8 {dimension_numbers = #tpu.dot_dimension_numbers<[1], [0], [0], [1], [0, 0, 1, 1], [], []>} : vector<64x32xf32>, vector<32x32xf32>, vector<64x32xf32> -> vector<64x32xf32>
    %c0_9 = arith.constant 0 : index
    %c0_10 = arith.constant 0 : index
    %10 = vector.load %arg5[%c0_9, %c0_10] : memref<1x32xf32, #tpu.memory_space<vmem>>, vector<1x32xf32>
    %11 = vector.broadcast %10 : vector<1x32xf32> to vector<64x32xf32>
    %12 = arith.addf %9, %11 : vector<64x32xf32>
    %cst_11 = arith.constant 0.000000e+00 : f32
    %13 = vector.broadcast %cst_11 : f32 to vector<64x32xf32>
    %14 = arith.maximumf %12, %13 : vector<64x32xf32>
    %c0_12 = arith.constant 0 : index
    %c0_13 = arith.constant 0 : index
    %15 = vector.load %arg6[%c0_12, %c0_13] : memref<32x128xf32, #tpu.memory_space<vmem>>, vector<32x128xf32>
    %cst_14 = arith.constant dense<0.000000e+00> : vector<64x128xf32>
    %16 = tpu.matmul %14, %15, %cst_14 {dimension_numbers = #tpu.dot_dimension_numbers<[1], [0], [0], [1], [0, 0, 1, 1], [], []>} : vector<64x32xf32>, vector<32x128xf32>, vector<64x128xf32> -> vector<64x128xf32>
    %c0_15 = arith.constant 0 : index
    %c0_16 = arith.constant 0 : index
    %17 = vector.load %arg7[%c0_15, %c0_16] : memref<1x128xf32, #tpu.memory_space<vmem>>, vector<1x128xf32>
    %18 = vector.broadcast %17 : vector<1x128xf32> to vector<64x128xf32>
    %19 = arith.addf %16, %18 : vector<64x128xf32>
    %20 = math.tanh %19 : vector<64x128xf32>
    %c0_17 = arith.constant 0 : index
    %c0_18 = arith.constant 0 : index
    %21 = vector.load %arg8[%c0_17, %c0_18] : memref<64x128xf32, #tpu.memory_space<vmem>>, vector<64x128xf32>
    tpu.vector_store %arg8[%c0_17, %c0_18], %20 {strides = array<i32>} : memref<64x128xf32, #tpu.memory_space<vmem>>, vector<64x128xf32>,
    return
  }
  func.func @transform_0(%arg0: i32) -> (i32, i32) {
    %c0_i32 = arith.constant 0 : i32
    %c0_i32_0 = arith.constant 0 : i32
    return %arg0, %c0_i32 : i32, i32
  }
  func.func @transform_1(%arg0: i32) -> (i32, i32) {
    %c0_i32 = arith.constant 0 : i32
    %c0_i32_0 = arith.constant 0 : i32
    %c0_i32_1 = arith.constant 0 : i32
    return %c0_i32, %c0_i32_0 : i32, i32
  }
  func.func @transform_2(%arg0: i32) -> (i32, i32) {
    %c0_i32 = arith.constant 0 : i32
    %c0_i32_0 = arith.constant 0 : i32
    %c0_i32_1 = arith.constant 0 : i32
    return %c0_i32, %c0_i32_0 : i32, i32
  }
  func.func @transform_3(%arg0: i32) -> (i32, i32) {
    %c0_i32 = arith.constant 0 : i32
    %c0_i32_0 = arith.constant 0 : i32
    %c0_i32_1 = arith.constant 0 : i32
    return %c0_i32, %c0_i32_0 : i32, i32
  }
  func.func @transform_4(%arg0: i32) -> (i32, i32) {
    %c0_i32 = arith.constant 0 : i32
    %c0_i32_0 = arith.constant 0 : i32
    %c0_i32_1 = arith.constant 0 : i32
    return %c0_i32, %c0_i32_0 : i32, i32
  }
  func.func @transform_5(%arg0: i32) -> (i32, i32) {
    %c0_i32 = arith.constant 0 : i32
    %c0_i32_0 = arith.constant 0 : i32
    %c0_i32_1 = arith.constant 0 : i32
    return %c0_i32, %c0_i32_0 : i32, i32
  }
  func.func @transform_6(%arg0: i32) -> (i32, i32) {
    %c0_i32 = arith.constant 0 : i32
    %c0_i32_0 = arith.constant 0 : i32
    %c0_i32_1 = arith.constant 0 : i32
    return %c0_i32, %c0_i32_0 : i32, i32
  }
  func.func @transform_7(%arg0: i32) -> (i32, i32) {
    %c0_i32 = arith.constant 0 : i32
    %c0_i32_0 = arith.constant 0 : i32
    return %arg0, %c0_i32 : i32, i32
  }
}

</mosaic_0001>

<bundles_post_ra>
// kernel: tpu_custom_call.1
= control target key start
LH: loop header
LB: loop body
LE: loop exit
PB: predicated region body
PF: predicated region fallthrough
CT: control target
= control target key end

     0   :  { %vm44_vm0 = vcmask 130048   ;;  %s827_s0 = inlined_call_operand.vmem [shape: f32[64,16], index: 0, kind: input, shape index: {}]   ;;  %s828_s1 = inlined_call_operand.vmem [shape: f32[16,32], index: 1, kind: input, shape index: {}]   ;;  %s829_s2 = inlined_call_operand.vmem [shape: f32[1,32], index: 2, kind: input, shape index: {}]   ;;  %s830_s3 = inlined_call_operand.vmem [shape: f32[32,32], index: 3, kind: input, shape index: {}]   ;;  %s831_s4 = inlined_call_operand.vmem [shape: f32[1,32], index: 4, kind: input, shape index: {}]   ;;  %s832_s5 = inlined_call_operand.vmem [shape: f32[32,128], index: 5, kind: input, shape index: {}]   ;;  %s833_s6 = inlined_call_operand.vmem [shape: f32[1,128], index: 6, kind: input, shape index: {}]   ;;  %s834_s7 = inlined_call_operand.hbm [shape: f32[64,128], index: 7, kind: output, shape index: {}]  }
   0x1   :  { %v35_v0 = vld [vmem:[%s828_s1] sm:$0xff]  ;;  %v36_v1 = vld [vmem:[%s828_s1 + $0x8] sm:$0xff] }
   0x2   :  { %v27_v2 = vld [vmem:[%s827_s0] sm:$0xff]  ;;  %v620_v3 = vpack.c.bf16 %v36_v1, %v35_v0  ;;  %v183_v6 = vld [vmem:[%s830_s3 + $0x8] sm:$0xff] }
   0x3   :  { %568 = vmatprep.mubr.msk.f32.mxu0 %vm44_vm0, %v27_v2  ;;  %v31_v4 = vld [vmem:[%s827_s0 + $0x20] sm:$0xff]  ;;  %v28_v7 = vld [vmem:[%s827_s0 + $0x8] sm:$0xff] }
   0x4   :  { %621 = vmatprep.subr.bf16.mxu0 %v620_v3  ;;  %640 = vmatprep.subr.bf16.mxu1 %v620_v3  ;;  %v182_v5 = vld [vmem:[%s830_s3] sm:$0xff]  ;;  %v32_v8 = vld [vmem:[%s827_s0 + $0x28] sm:$0xff] }
   0x5   :  { %623 = vmatpush3.bf16.msra.mxu0 %v620_v3  ;;  %641 = vmatpush3.bf16.msra.mxu1 %v620_v3  ;;  %v624_v9 = vpack.c.bf16 %v183_v6, %v182_v5 }
   0x6   :  { %12 = vsyncpa [#allocation3], 0  ;;  %v29_v10 = vld [vmem:[%s827_s0 + $0x10] sm:$0xff]  ;;  %574 = vmatprep.mubr.msk.f32.mxu1 %vm44_vm0, %v31_v4  ;;  %v30_v12 = vld [vmem:[%s827_s0 + $0x18] sm:$0xff]  ;;  %vm193_vm1 = vcmask 261120  }
   0x7   :  { %v33_v11 = vld [vmem:[%s827_s0 + $0x30] sm:$0xff]  ;;  %625 = vmatprep.subr.bf16.mxu1 %v624_v9  ;;  %v34_v13 = vld [vmem:[%s827_s0 + $0x38] sm:$0xff]  ;;  %v331_v17 = vld [vmem:[%s832_s5] sm:$0xff] }
   0x8   :  { %569 = vmatmul.mubr.msk.f32.vlgmr.msra.gmra.mrb[0].mxu0 %vm44_vm0, %v28_v7  ;;  %575 = vmatmul.mubr.msk.f32.vlgmr.msra.gmra.mrb[0].mxu1 %vm44_vm0, %v32_v8  ;;  %v184_v14 = vld [vmem:[%s830_s3 + $0x10] sm:$0xff]  ;;  %v185_v15 = vld [vmem:[%s830_s3 + $0x18] sm:$0xff]  ;;  %v332_v18 = vld [vmem:[%s832_s5 + $0x8] sm:$0xff] }
   0x9   :  { %571 = vmatprep.mubr.msk.f32.mxu0 %vm44_vm0, %v29_v10  ;;  %577 = vmatprep.mubr.msk.f32.mxu1 %vm44_vm0, %v33_v11  ;;  %v628_v16 = vpack.c.bf16 %v185_v15, %v184_v14  ;;  %v632_v19 = vpack.c.bf16 %v332_v18, %v331_v17  ;;  %v503_v20 = vld [vmem:[%s829_s2] ss:$0 sm:$0xff]  ;;  %v333_v45 = vld [vmem:[%s832_s5 + $0x10] sm:$0xff]  ;;  %v334_v46 = vld [vmem:[%s832_s5 + $0x18] sm:$0xff] }
   0xa   :  { %627 = vmatpush3.bf16.msra.mxu1 %v624_v9  ;;  %v636_v47 = vpack.c.bf16 %v334_v46, %v333_v45  ;;  %v512_v48 = vld [vmem:[%s831_s4] ss:$0 sm:$0xff] }
   0xb   :  { %629 = vmatprep.subr.bf16.mxu1 %v628_v16  ;;  %633 = vmatprep.subr.bf16.mxu0 %v632_v19  ;;  %v521_v9 = vld [vmem:[%s833_s6] ss:$0 sm:$0xff]  ;;  %s685_s6 = smov [#allocation2]  }
   0xc   :  { %572 = vmatmul.mubr.msk.f32.gmra.mrb[2].mxu0 %vm44_vm0, %v30_v12  ;;  %578 = vmatmul.mubr.msk.f32.gmra.mrb[2].mxu1 %vm44_vm0, %v34_v13  ;;  %s492_s13 = sshll.u32 %s685_s6, 4  ;;  %s493_s13 = int_to_ptr.vmem [resolvable:$true] %s492_s13 }
   0xd   :  { %635 = vmatpush3.bf16.msra.mxu0 %v632_v19  ;;  %s661_s14 = scalar_lea.vmem %s493_s13, 1024  ;;  %p666_p1 = scmp.lt.s32.totalorder %s493_s13, %s493_s13 }
   0xe   :  { %631 = vmatpush3.bf16.msra.mxu1 %v628_v16  ;;  %637 = vmatprep.subr.bf16.mxu0 %v636_v47  ;;  %p662_p0 = scmp.ne.s32.totalorder %s493_s13, %s661_s14  ;;  %p667_p2 = scmp.lt.s32.totalorder %s661_s14, %s661_s14 }
  0x10   :  { %p668_p3 = por %p667_p2, %p666_p1 }
  0x11   :  { %639 = vmatpush3.bf16.msra.mxu0 %v636_v47 }
  0x12   :  { %p669_p4 = pnand %p668_p3, %p662_p0 }
  0xdb   :  { %v570_v21 = vpop.f32.mrb[0].mxu0  ;;  %v576_v22 = vpop.f32.mrb[0].mxu1 }
  0xdc   :  { %v141_v23 = vadd.f32 %v570_v21, %v503_v20  ;;  %v135_v24 = vpop.f32.mrb[1].mxu0  ;;  %v155_v25 = vpop.f32.mrb[1].mxu1  ;;  %v161_v40 = vadd.f32 %v576_v22, %v503_v20 }
  0xdd   :  { %v136_v26 = vadd.f32 %v503_v20, %v135_v24  ;;  %v156_v29 = vadd.f32 %v503_v20, %v155_v25 }
  0xde   :  { %v175_v31 = vmax.f32 %v141_v23, 0.0  ;;  %v179_v42 = vmax.f32 %v161_v40, 0.0 }
  0xdf   :  { %v174_v27 = vmax.f32 %v136_v26, 0.0  ;;  %v573_v28 = vpop.f32.mrb[2].mxu0  ;;  %v579_v30 = vpop.f32.mrb[2].mxu1  ;;  %v178_v37 = vmax.f32 %v156_v29, 0.0 }
  0xe0   :  { %v151_v32 = vadd.f32 %v573_v28, %v503_v20  ;;  %v145_v33 = vpop.f32.mrb[3].mxu0  ;;  %v165_v34 = vpop.f32.mrb[3].mxu1  ;;  %v171_v43 = vadd.f32 %v579_v30, %v503_v20 }
  0xe1   :  { %v146_v35 = vadd.f32 %v503_v20, %v145_v33  ;;  %588 = vmatprep.mubr.msk.f32.mxu1 %vm193_vm1, %v174_v27  ;;  %v166_v38 = vadd.f32 %v503_v20, %v165_v34 }
  0xe2   :  { %589 = vmatmul.mubr.msk.f32.vlgmr.msra.gmra.mrb[4].mxu1 %vm193_vm1, %v175_v31  ;;  %v177_v39 = vmax.f32 %v151_v32, 0.0  ;;  %v181_v44 = vmax.f32 %v171_v43, 0.0 }
  0xe3   :  { %v176_v36 = vmax.f32 %v146_v35, 0.0  ;;  %v180_v41 = vmax.f32 %v166_v38, 0.0 }
  0xe5   :  { %591 = vmatprep.mubr.msk.f32.mxu1 %vm193_vm1, %v176_v36 }
  0xe6   :  { %592 = vmatmul.mubr.msk.f32.gmra.mrb[6].mxu1 %vm193_vm1, %v177_v39 }
  0xe7   :  { %594 = vmatprep.mubr.msk.f32.mxu1 %vm193_vm1, %v178_v37 }
  0xea   :  { %595 = vmatmul.mubr.msk.f32.gmra.mrb[8].mxu1 %vm193_vm1, %v179_v42 }
  0xeb   :  { %597 = vmatprep.mubr.msk.f32.mxu1 %vm193_vm1, %v180_v41 }
  0xee   :  { %598 = vmatmul.mubr.msk.f32.gmra.mrb[10].mxu1 %vm193_vm1, %v181_v44 }
 0x1b5   :  { %v590_v49 = vpop.f32.mrb[4].mxu1 }
 0x1b6   :  { %v290_v50 = vadd.f32 %v590_v49, %v512_v48  ;;  %v284_v51 = vpop.f32.mrb[5].mxu1 }
 0x1b7   :  { %v285_v52 = vadd.f32 %v512_v48, %v284_v51 }
 0x1b8   :  { %v324_v55 = vmax.f32 %v290_v50, 0.0 }
 0x1b9   :  { %v323_v53 = vmax.f32 %v285_v52, 0.0  ;;  %v593_v54 = vpop.f32.mrb[6].mxu1 }
 0x1ba   :  { %v300_v56 = vadd.f32 %v593_v54, %v512_v48  ;;  %v294_v57 = vpop.f32.mrb[7].mxu1 }
 0x1bb   :  { %v295_v58 = vadd.f32 %v512_v48, %v294_v57  ;;  %608 = vmatprep.mubr.msk.f32.mxu0 %vm193_vm1, %v323_v53 }
 0x1bc   :  { %609 = vmatmul.mubr.msk.f32.vlgmr.msra.gmra.mrb[4].mxu0 %vm193_vm1, %v324_v55  ;;  %v326_v61 = vmax.f32 %v300_v56, 0.0 }
 0x1bd   :  { %v325_v59 = vmax.f32 %v295_v58, 0.0  ;;  %v596_v60 = vpop.f32.mrb[8].mxu1 }
 0x1be   :  { %v310_v62 = vadd.f32 %v596_v60, %v512_v48  ;;  %v304_v63 = vpop.f32.mrb[9].mxu1 }
 0x1bf   :  { %v305_v0 = vadd.f32 %v512_v48, %v304_v63  ;;  %611 = vmatprep.mubr.msk.f32.mxu0 %vm193_vm1, %v325_v59 }
 0x1c0   :  { %612 = vmatmul.mubr.msk.f32.gmra.mrb[6].mxu0 %vm193_vm1, %v326_v61  ;;  %v328_v3 = vmax.f32 %v310_v62, 0.0 }
 0x1c1   :  { %v327_v1 = vmax.f32 %v305_v0, 0.0  ;;  %v599_v2 = vpop.f32.mrb[10].mxu1 }
 0x1c2   :  { %v320_v4 = vadd.f32 %v599_v2, %v512_v48  ;;  %v314_v5 = vpop.f32.mrb[11].mxu1 }
 0x1c3   :  { %v315_v6 = vadd.f32 %v512_v48, %v314_v5  ;;  %614 = vmatprep.mubr.msk.f32.mxu0 %vm193_vm1, %v327_v1 }
 0x1c4   :  { %615 = vmatmul.mubr.msk.f32.gmra.mrb[8].mxu0 %vm193_vm1, %v328_v3  ;;  %v330_v8 = vmax.f32 %v320_v4, 0.0 }
 0x1c5   :  { %v329_v7 = vmax.f32 %v315_v6, 0.0 }
 0x1c7   :  { %617 = vmatprep.mubr.msk.f32.mxu0 %vm193_vm1, %v329_v7 }
 0x1c8   :  { %618 = vmatmul.mubr.msk.f32.gmra.mrb[10].mxu0 %vm193_vm1, %v330_v8 }
 0x28f   :  { %v610_v10 = vpop.f32.mrb[4].mxu0 }
 0x290   :  { %v438_v11 = vadd.f32 %v610_v10, %v521_v9  ;;  %v432_v12 = vpop.f32.mrb[5].mxu0 }
 0x291   :  { %v433_v13 = vadd.f32 %v521_v9, %v432_v12 }
 0x292   :  { %645 = vtanh.f32 %v438_v11 }
 0x293   :  { %647 = vtanh.f32 %v433_v13  ;;  %v613_v14 = vpop.f32.mrb[6].mxu0 }
 0x294   :  { %v448_v15 = vadd.f32 %v613_v14, %v521_v9  ;;  %v442_v16 = vpop.f32.mrb[7].mxu0 }
 0x295   :  { %v443_v17 = vadd.f32 %v521_v9, %v442_v16 }
 0x296   :  { %649 = vtanh.f32 %v448_v15 }
 0x297   :  { %651 = vtanh.f32 %v443_v17  ;;  %v616_v18 = vpop.f32.mrb[8].mxu0 }
 0x298   :  { %v458_v19 = vadd.f32 %v616_v18, %v521_v9  ;;  %v452_v20 = vpop.f32.mrb[9].mxu0 }
 0x299   :  { %v453_v21 = vadd.f32 %v521_v9, %v452_v20 }
 0x29a   :  { %653 = vtanh.f32 %v458_v19 }
 0x29b   :  { %655 = vtanh.f32 %v453_v21  ;;  %v619_v22 = vpop.f32.mrb[10].mxu0 }
 0x29c   :  { %v646_v23 = vpop.eup %645  ;;  %v468_v24 = vadd.f32 %v619_v22, %v521_v9  ;;  %v462_v25 = vpop.f32.mrb[11].mxu0 }
 0x29d   :  { %v648_v26 = vpop.eup %647  ;;  %480 = vst [vmem:[#allocation2 + $0x8] sm:$0xff] %v646_v23  ;;  %v463_v27 = vadd.f32 %v521_v9, %v462_v25 }
 0x29e   :  { %479 = vst [vmem:[#allocation2] sm:$0xff] %v648_v26  ;;  %657 = vtanh.f32 %v468_v24 }
 0x29f   :  { %659 = vtanh.f32 %v463_v27 }
 0x2a0   :  { %v650_v28 = vpop.eup %649 }
 0x2a1   :  { %v652_v29 = vpop.eup %651  ;;  %482 = vst [vmem:[#allocation2 + $0x18] sm:$0xff] %v650_v28 }
 0x2a2   :  { %481 = vst [vmem:[#allocation2 + $0x10] sm:$0xff] %v652_v29 }
 0x2a4   :  { %v654_v30 = vpop.eup %653 }
 0x2a5   :  { %v656_v31 = vpop.eup %655  ;;  %484 = vst [vmem:[#allocation2 + $0x28] sm:$0xff] %v654_v30 }
 0x2a6   :  { %483 = vst [vmem:[#allocation2 + $0x20] sm:$0xff] %v656_v31 }
 0x2a8   :  { %v658_v32 = vpop.eup %657 }
 0x2a9   :  { %v660_v33 = vpop.eup %659  ;;  %486 = vst [vmem:[#allocation2 + $0x38] sm:$0xff] %v658_v32 }
 0x2aa   :  { %485 = vst [vmem:[#allocation2 + $0x30] sm:$0xff] %v660_v33 }
 0x2ab   :  { %672 = shalt.err (!%p669_p4)
}
 0x2ac   :  { %s673_s17 = scalar_lea.hbm %s834_s7, 1024 }
 0x2ad   :  { %p674_p5 = scmp.ne.s32.totalorder %s834_s7, %s673_s17  ;;  %p677_p6 = scmp.lt.u32.totalorder %s673_s17, %s834_s7 }
 0x2af   :  { %p679_p7 = pnand %p677_p6, %p674_p5 }
 0x2b1   :  { %682 = shalt.err (!%p679_p7)
}
 0x2b2   :  { %s686_s22 = smov 128   ;;  %s687_s23 = smov 8  }
 0x2b3   :  { %498 = dma.vmem_to_hbm [thread:$0]  %s493_s13, 1024, %s834_s7, [#allocation3], %s686_s22, %s686_s22, %s687_s23  }
 0x2b4   :  { %683 = dma.done.wait [#allocation3], 1024  }
 0x2b5   :  { %684 = vsyncadd [#allocation3], 4294966272 }
 0x2b6   :  { %502 = vsyncpa [#allocation3], 1 }

</bundles_post_ra>
